<compile_context>
chip_gen: v6e
topology: v6e:2x2x1
jax: 0.10.0
libtpu: 0.0.40
codegen_flags: <defaults>
</compile_context>

<pallas_src>
import math

import jax
import jax.numpy as jnp
from jax.experimental import pallas as pl
from jax.experimental.pallas import tpu as pltpu

# TODO(synk): nn.Dropout (hidden/attention) is identity in eval mode; stochastic
#             training-mode dropout is intentionally omitted.
# TODO(synk): relative_key / relative_key_query position embeddings are not
#             implemented (module defaults to 'absolute').
# TODO(synk): GELU uses the tanh approximation in both kernel and reference
#             (exact erf-based HF ACT2FN['gelu'] differs by <1e-3).

_DEFAULT_ROW_TILE = 256
_VMEM_LIMIT = 32 * 1024 * 1024


def _gelu_tanh(x):
    c = math.sqrt(2.0 / math.pi)
    return 0.5 * x * (1.0 + jnp.tanh(c * (x + 0.044715 * x * x * x)))


def _choose_row_tile(m, requested=_DEFAULT_ROW_TILE):
    if m >= requested:
        return requested
    # small problems: round up to a sublane/bf16-packing friendly multiple of 16
    return max(16, ((m + 15) // 16) * 16)


def _pad_rows(x2, row_tile):
    m = x2.shape[0]
    m_pad = ((m + row_tile - 1) // row_tile) * row_tile
    if m_pad != m:
        x2 = jnp.pad(x2, ((0, m_pad - m), (0, 0)))
    return x2, m_pad


# ----------------------------------------------------------------------------
# Kernel 1: dense (+ bias, + optional GELU)
# ----------------------------------------------------------------------------
def _dense_kernel(activation):
    def kernel(x_ref, w_ref, b_ref, o_ref):
        h = jnp.dot(x_ref[...], w_ref[...], preferred_element_type=jnp.float32)
        h = h + b_ref[...].astype(jnp.float32)
        if activation == "gelu":
            h = _gelu_tanh(h)
        o_ref[...] = h.astype(o_ref.dtype)
    return kernel


def dense(x2, weight, bias, *, activation=None, row_tile=None):
    """x2: [M, K]; weight: [N, K] (PyTorch (out, in)); bias: [N]."""
    m, k = x2.shape
    n = weight.shape[0]
    rt = row_tile or _choose_row_tile(m)
    xp, m_pad = _pad_rows(x2, rt)
    w_t = weight.T.astype(x2.dtype)                 # (K, N), matmul dtype
    b2 = bias.astype(jnp.float32).reshape(1, n)

    itemsize = jnp.dtype(x2.dtype).itemsize
    cost = pl.CostEstimate(
        flops=2 * m_pad * k * n,
        transcendentals=m_pad * n if activation == "gelu" else 0,
        bytes_accessed=(m_pad * k + k * n + m_pad * n) * itemsize,
    )
    out = pl.pallas_call(
        _dense_kernel(activation),
        out_shape=jax.ShapeDtypeStruct((m_pad, n), x2.dtype),
        grid_spec=pltpu.PrefetchScalarGridSpec(
            num_scalar_prefetch=0,
            grid=(m_pad // rt,),
            in_specs=[
                pl.BlockSpec((rt, k), lambda i: (i, 0)),   # activations
                pl.BlockSpec((k, n), lambda i: (0, 0)),    # resident weight
                pl.BlockSpec((1, n), lambda i: (0, 0)),    # bias
            ],
            out_specs=pl.BlockSpec((rt, n), lambda i: (i, 0)),
        ),
        compiler_params=pltpu.CompilerParams(
            dimension_semantics=("parallel",),
            vmem_limit_bytes=_VMEM_LIMIT),
        cost_estimate=cost,
    )(xp, w_t, b2)
    return out[:m]


# ----------------------------------------------------------------------------
# Kernel 2: dense + bias + residual + LayerNorm (BertSelfOutput / BertOutput)
# ----------------------------------------------------------------------------
def _dense_residual_ln_kernel(eps):
    def kernel(x_ref, res_ref, w_ref, b_ref, g_ref, beta_ref, o_ref):
        h = jnp.dot(x_ref[...], w_ref[...], preferred_element_type=jnp.float32)
        h = h + b_ref[...].astype(jnp.float32)
        h = h + res_ref[...].astype(jnp.float32)        # dropout = identity
        mean = jnp.mean(h, axis=-1, keepdims=True)
        c = h - mean
        var = jnp.mean(c * c, axis=-1, keepdims=True)
        normed = c * jax.lax.rsqrt(var + eps)
        o_ref[...] = (normed * g_ref[...].astype(jnp.float32)
                      + beta_ref[...].astype(jnp.float32)).astype(o_ref.dtype)
    return kernel


def dense_residual_layernorm(x2, res2, weight, bias, gamma, beta, *, eps,
                             row_tile=None):
    """x2: [M, K]; res2: [M, N]; weight: [N, K]; bias/gamma/beta: [N]."""
    m, k = x2.shape
    n = weight.shape[0]
    rt = row_tile or _choose_row_tile(m)
    xp, m_pad = _pad_rows(x2, rt)
    rp, _ = _pad_rows(res2, rt)
    w_t = weight.T.astype(x2.dtype)
    b2 = bias.astype(jnp.float32).reshape(1, n)
    g2 = gamma.astype(jnp.float32).reshape(1, n)
    be2 = beta.astype(jnp.float32).reshape(1, n)

    itemsize = jnp.dtype(x2.dtype).itemsize
    cost = pl.CostEstimate(
        flops=2 * m_pad * k * n + 8 * m_pad * n,
        transcendentals=m_pad,
        bytes_accessed=(m_pad * k + m_pad * n + k * n + m_pad * n) * itemsize,
    )
    out = pl.pallas_call(
        _dense_residual_ln_kernel(eps),
        out_shape=jax.ShapeDtypeStruct((m_pad, n), x2.dtype),
        grid_spec=pltpu.PrefetchScalarGridSpec(
            num_scalar_prefetch=0,
            grid=(m_pad // rt,),
            in_specs=[
                pl.BlockSpec((rt, k), lambda i: (i, 0)),   # matmul input rows
                pl.BlockSpec((rt, n), lambda i: (i, 0)),   # residual rows
                pl.BlockSpec((k, n), lambda i: (0, 0)),    # resident weight
                pl.BlockSpec((1, n), lambda i: (0, 0)),    # bias
                pl.BlockSpec((1, n), lambda i: (0, 0)),    # LN gamma
                pl.BlockSpec((1, n), lambda i: (0, 0)),    # LN beta
            ],
            out_specs=pl.BlockSpec((rt, n), lambda i: (i, 0)),
        ),
        compiler_params=pltpu.CompilerParams(
            dimension_semantics=("parallel",),
            vmem_limit_bytes=_VMEM_LIMIT),
        cost_estimate=cost,
    )(xp, rp, w_t, b2, g2, be2)
    return out[:m]


# ----------------------------------------------------------------------------
# Kernel 3: scaled dot-product attention (per batch, per head)
# ----------------------------------------------------------------------------
def _attention_kernel(scale):
    def kernel(q_ref, k_ref, v_ref, m_ref, o_ref):
        q = q_ref[0, 0]                                  # (S, d)
        k = k_ref[0, 0]
        v = v_ref[0, 0]
        mask = m_ref[0].astype(jnp.float32)              # (S, S) additive mask
        # scores = q @ k^T (contract head dim on both) -> f32
        s = jax.lax.dot_general(q, k, (((1,), (1,)), ((), ())),
                                preferred_element_type=jnp.float32)
        s = s * scale + mask
        s = s - jnp.max(s, axis=-1, keepdims=True)
        p = jnp.exp(s)
        p = p / jnp.sum(p, axis=-1, keepdims=True)
        # attention-prob dropout = identity (inference)
        ctx = jnp.dot(p.astype(v.dtype), v, preferred_element_type=jnp.float32)
        o_ref[...] = ctx[None, None, :, :].astype(o_ref.dtype)
    return kernel


def attention(qh, kh, vh, mask_b, *, scale):
    """qh/kh/vh: [B, nh, S, d]; mask_b: [B, S, S] (additive, f32)."""
    b, nh, s, d = qh.shape
    return pl.pallas_call(
        _attention_kernel(scale),
        out_shape=jax.ShapeDtypeStruct((b, nh, s, d), qh.dtype),
        grid_spec=pltpu.PrefetchScalarGridSpec(
            num_scalar_prefetch=0,
            grid=(b, nh),
            in_specs=[
                pl.BlockSpec((1, 1, s, d), lambda bi, hi: (bi, hi, 0, 0)),
                pl.BlockSpec((1, 1, s, d), lambda bi, hi: (bi, hi, 0, 0)),
                pl.BlockSpec((1, 1, s, d), lambda bi, hi: (bi, hi, 0, 0)),
                pl.BlockSpec((1, s, s), lambda bi, hi: (bi, 0, 0)),
            ],
            out_specs=pl.BlockSpec((1, 1, s, d), lambda bi, hi: (bi, hi, 0, 0)),
        ),
        compiler_params=pltpu.CompilerParams(
            dimension_semantics=("parallel", "parallel"),
            vmem_limit_bytes=_VMEM_LIMIT),
    )(qh, kh, vh, mask_b)


# ----------------------------------------------------------------------------
# BertLayer / BertEncoder forward built from the kernels above
# ----------------------------------------------------------------------------
def _prepare_mask(attention_mask, b, s):
    if attention_mask is None:
        return jnp.zeros((b, s, s), dtype=jnp.float32)
    m = attention_mask.astype(jnp.float32)
    if m.ndim == 4:          # [B, 1, 1 or S, S]
        m = m[:, 0]
    if m.ndim == 2:          # [B, S]
        m = m[:, None, :]
    return jnp.broadcast_to(m, (b, s, s))


def bert_layer_forward(x, p, config, attention_mask=None):
    b, s, h = x.shape
    nh = config["num_attention_heads"]
    d = h // nh
    eps = config["layer_norm_eps"]
    x2 = x.reshape(b * s, h)

    # --- BertSelfAttention: fused QKV projection + attention ---
    w_qkv = jnp.concatenate([p["wq"], p["wk"], p["wv"]], axis=0)   # (3H, H)
    b_qkv = jnp.concatenate([p["bq"], p["bk"], p["bv"]], axis=0)
    qkv = dense(x2, w_qkv, b_qkv)                                  # (B*S, 3H)
    q2, k2, v2 = jnp.split(qkv, 3, axis=-1)

    def split_heads(t):
        return t.reshape(b, s, nh, d).transpose(0, 2, 1, 3)

    mask_b = _prepare_mask(attention_mask, b, s)
    ctx = attention(split_heads(q2), split_heads(k2), split_heads(v2),
                    mask_b, scale=1.0 / math.sqrt(d))              # (B, nh, S, d)
    ctx2 = ctx.transpose(0, 2, 1, 3).reshape(b * s, h)

    # --- BertSelfOutput: dense + residual + LN ---
    attn_out2 = dense_residual_layernorm(ctx2, x2, p["wo"], p["bo"],
                                         p["g1"], p["be1"], eps=eps)

    # --- BertIntermediate: dense + GELU ---
    inter2 = dense(attn_out2, p["wi"], p["bi"], activation="gelu")

    # --- BertOutput: dense + residual + LN ---
    out2 = dense_residual_layernorm(inter2, attn_out2, p["wo2"], p["bo2"],
                                    p["g2"], p["be2"], eps=eps)
    return out2.reshape(b, s, h)


def bert_encoder_forward(step, hidden_states, layers, config,
                         attention_mask=None):
    for i, layer_params in enumerate(layers):
        if i == step:
            hidden_states = bert_layer_forward(hidden_states, layer_params,
                                               config, attention_mask)
            break
    return hidden_states


# ----------------------------------------------------------------------------
# Pure-JAX reference
# ----------------------------------------------------------------------------
def _ref_layernorm(h, gamma, beta, eps):
    mean = jnp.mean(h, axis=-1, keepdims=True)
    var = jnp.mean((h - mean) ** 2, axis=-1, keepdims=True)
    return (h - mean) / jnp.sqrt(var + eps) * gamma + beta


def _reference_layer(x, p, config, attention_mask=None):
    b, s, h = x.shape
    nh = config["num_attention_heads"]
    d = h // nh
    eps = config["layer_norm_eps"]

    def lin(t, w, bias):
        return t @ w.T + bias

    def split_heads(t):
        return t.reshape(b, s, nh, d).transpose(0, 2, 1, 3)

    qh = split_heads(lin(x, p["wq"], p["bq"]))
    kh = split_heads(lin(x, p["wk"], p["bk"]))
    vh = split_heads(lin(x, p["wv"], p["bv"]))
    scores = jnp.einsum("bhqd,bhkd->bhqk", qh, kh) / math.sqrt(d)
    if attention_mask is not None:
        scores = scores + attention_mask
    probs = jax.nn.softmax(scores, axis=-1)
    ctx = jnp.einsum("bhqk,bhkd->bhqd", probs, vh)
    ctx = ctx.transpose(0, 2, 1, 3).reshape(b, s, h)

    attn_out = _ref_layernorm(lin(ctx, p["wo"], p["bo"]) + x,
                              p["g1"], p["be1"], eps)
    inter = _gelu_tanh(lin(attn_out, p["wi"], p["bi"]))
    out = _ref_layernorm(lin(inter, p["wo2"], p["bo2"]) + attn_out,
                         p["g2"], p["be2"], eps)
    return out


def _reference_encoder(step, x, layers, config, attention_mask=None):
    for i, p in enumerate(layers):
        if i == step:
            x = _reference_layer(x, p, config, attention_mask)
            break
    return x


# ----------------------------------------------------------------------------
# Parameter init + test
# ----------------------------------------------------------------------------
def init_bert_layer_params(key, hidden, intermediate):
    keys = jax.random.split(key, 6)

    def linear(k, out_dim, in_dim):
        bound = 1.0 / math.sqrt(in_dim)
        kw, kb = jax.random.split(k)
        w = jax.random.uniform(kw, (out_dim, in_dim), minval=-bound,
                               maxval=bound, dtype=jnp.float32)
        bias = jax.random.uniform(kb, (out_dim,), minval=-bound,
                                  maxval=bound, dtype=jnp.float32)
        return w, bias

    wq, bq = linear(keys[0], hidden, hidden)
    wk, bk = linear(keys[1], hidden, hidden)
    wv, bv = linear(keys[2], hidden, hidden)
    wo, bo = linear(keys[3], hidden, hidden)
    wi, bi = linear(keys[4], intermediate, hidden)
    wo2, bo2 = linear(keys[5], hidden, intermediate)
    return dict(
        wq=wq, bq=bq, wk=wk, bk=bk, wv=wv, bv=bv,
        wo=wo, bo=bo, g1=jnp.ones((hidden,), jnp.float32),
        be1=jnp.zeros((hidden,), jnp.float32),
        wi=wi, bi=bi, wo2=wo2, bo2=bo2,
        g2=jnp.ones((hidden,), jnp.float32),
        be2=jnp.zeros((hidden,), jnp.float32),
    )


if __name__ == "__main__":
    config = dict(
        hidden_size=32, num_attention_heads=4, intermediate_size=64,
        num_hidden_layers=2, layer_norm_eps=1e-12,
        hidden_dropout_prob=0.1, attention_probs_dropout_prob=0.1,
        hidden_act="gelu",
    )
    B, S, H = 2, 8, config["hidden_size"]

    key = jax.random.PRNGKey(0)
    k_x, k_p = jax.random.split(key)
    hidden_states = jax.random.normal(k_x, (B, S, H), dtype=jnp.float32)

    # additive attention mask (mask out last two tokens of batch 1)
    attention_mask = jnp.zeros((B, 1, 1, S), dtype=jnp.float32)
    attention_mask = attention_mask.at[1, 0, 0, S - 2:].set(-10000.0)

    layer_keys = jax.random.split(k_p, config["num_hidden_layers"])
    layers = [init_bert_layer_params(k, H, config["intermediate_size"])
              for k in layer_keys]

    step = 1
    out = bert_encoder_forward(step, hidden_states, layers, config,
                               attention_mask=attention_mask)
    out = jax.block_until_ready(out)

    ref = _reference_encoder(step, hidden_states, layers, config,
                             attention_mask=attention_mask)
    assert out.shape == (B, S, H)
    max_err = float(jnp.max(jnp.abs(out - ref)))
    assert jnp.allclose(out, ref, atol=1e-3, rtol=1e-3), f"max err {max_err}"
    print("KERNEL_OK")
</pallas_src>

<mosaic_0001>
module attributes {stable_mosaic.version = 11 : i64} {
  func.func @kernel(%arg0: i32, %arg1: memref<16x32xf32, #tpu.memory_space<vmem>>, %arg2: memref<32x96xf32, #tpu.memory_space<vmem>>, %arg3: memref<1x96xf32, #tpu.memory_space<vmem>>, %arg4: memref<16x96xf32, #tpu.memory_space<vmem>>) attributes {dimension_semantics = [#tpu.dimension_semantics<parallel>], iteration_bounds = array<i64: 1>, scalar_prefetch = 0 : i64, scratch_operands = 0 : i64, tpu.core_type = #tpu.core_type<tc>, window_params = [{transform_indices = @transform_0, window_bounds = array<i64: 16, 32>}, {pipeline_mode = #tpu.pipeline_mode<synchronous>, transform_indices = @transform_1, window_bounds = array<i64: 32, 96>}, {pipeline_mode = #tpu.pipeline_mode<synchronous>, transform_indices = @transform_2, window_bounds = array<i64: 1, 96>}, {transform_indices = @transform_3, window_bounds = array<i64: 16, 96>}]} {
    %c0 = arith.constant 0 : index
    %c0_0 = arith.constant 0 : index
    %0 = vector.load %arg1[%c0, %c0_0] : memref<16x32xf32, #tpu.memory_space<vmem>>, vector<16x32xf32>
    %c0_1 = arith.constant 0 : index
    %c0_2 = arith.constant 0 : index
    %1 = vector.load %arg2[%c0_1, %c0_2] : memref<32x96xf32, #tpu.memory_space<vmem>>, vector<32x96xf32>
    %cst = arith.constant dense<0.000000e+00> : vector<16x96xf32>
    %2 = tpu.matmul %0, %1, %cst {dimension_numbers = #tpu.dot_dimension_numbers<[1], [0], [0], [1], [0, 0, 1, 1], [], []>} : vector<16x32xf32>, vector<32x96xf32>, vector<16x96xf32> -> vector<16x96xf32>
    %c0_3 = arith.constant 0 : index
    %c0_4 = arith.constant 0 : index
    %3 = vector.load %arg3[%c0_3, %c0_4] : memref<1x96xf32, #tpu.memory_space<vmem>>, vector<1x96xf32>
    %4 = vector.broadcast %3 : vector<1x96xf32> to vector<16x96xf32>
    %5 = arith.addf %2, %4 : vector<16x96xf32>
    %c0_5 = arith.constant 0 : index
    %c0_6 = arith.constant 0 : index
    %6 = vector.load %arg4[%c0_5, %c0_6] : memref<16x96xf32, #tpu.memory_space<vmem>>, vector<16x96xf32>
    tpu.vector_store %arg4[%c0_5, %c0_6], %5 {strides = array<i32>} : memref<16x96xf32, #tpu.memory_space<vmem>>, vector<16x96xf32>,
    return
  }
  func.func @transform_0(%arg0: i32) -> (i32, i32) {
    %c0_i32 = arith.constant 0 : i32
    %c0_i32_0 = arith.constant 0 : i32
    return %arg0, %c0_i32 : i32, i32
  }
  func.func @transform_1(%arg0: i32) -> (i32, i32) {
    %c0_i32 = arith.constant 0 : i32
    %c0_i32_0 = arith.constant 0 : i32
    %c0_i32_1 = arith.constant 0 : i32
    return %c0_i32, %c0_i32_0 : i32, i32
  }
  func.func @transform_2(%arg0: i32) -> (i32, i32) {
    %c0_i32 = arith.constant 0 : i32
    %c0_i32_0 = arith.constant 0 : i32
    %c0_i32_1 = arith.constant 0 : i32
    return %c0_i32, %c0_i32_0 : i32, i32
  }
  func.func @transform_3(%arg0: i32) -> (i32, i32) {
    %c0_i32 = arith.constant 0 : i32
    %c0_i32_0 = arith.constant 0 : i32
    return %arg0, %c0_i32 : i32, i32
  }
}

</mosaic_0001>

<bundles_post_ra>
// kernel: tpu_custom_call.1
= control target key start
LH: loop header
LB: loop body
LE: loop exit
PB: predicated region body
PF: predicated region fallthrough
CT: control target
= control target key end

     0   :  { %8 = vsyncpa [#allocation3], 0  ;;  %s298_s0 = inlined_call_operand.hbm [shape: f32[16,32], index: 0, kind: input, shape index: {}]   ;;  %s299_s1 = inlined_call_operand.hbm [shape: f32[32,96], index: 1, kind: input, shape index: {}]   ;;  %s300_s2 = inlined_call_operand.vmem [shape: f32[1,96], index: 2, kind: input, shape index: {}]   ;;  %s301_s3 = inlined_call_operand.hbm [shape: f32[16,96], index: 3, kind: output, shape index: {}]  }
   0x1   :  { %9 = vsyncpa [#allocation6], 0 }
   0x2   :  { %10 = vsyncpa [#allocation4], 0  ;;  %s250_s12 = smov [#allocation2]  }
   0x3   :  { %s16_s13 = sshll.u32 %s250_s12, 4  ;;  %s17_s13 = int_to_ptr.vmem [resolvable:$true] %s16_s13 }
   0x4   :  { %s192_s14 = scalar_lea.vmem %s17_s13, 256  ;;  %p197_p1 = scmp.lt.s32.totalorder %s17_s13, %s17_s13 }
   0x5   :  { %p193_p0 = scmp.ne.s32.totalorder %s17_s13, %s192_s14  ;;  %p198_p2 = scmp.lt.s32.totalorder %s192_s14, %s192_s14 }
   0x7   :  { %p199_p3 = por %p198_p2, %p197_p1 }
   0x9   :  { %p200_p4 = pnand %p199_p3, %p193_p0 }
   0xb   :  { %203 = shalt.err (!%p200_p4)
}
   0xc   :  { %s251_s15 = smov 128   ;;  %s252_s16 = smov 8  }
   0xd   :  { %22 = dma.hbm_to_vmem [thread:$0]  %s298_s0, 256, %s17_s13, [#allocation3], %s251_s15, %s251_s15, %s252_s16  }
   0xe   :  { %s253_s19 = smov [#allocation5]  }
   0xf   :  { %s28_s20 = sshll.u32 %s253_s19, 4  ;;  %s29_s20 = int_to_ptr.vmem [resolvable:$true] %s28_s20 }
  0x10   :  { %s212_s21 = scalar_lea.vmem %s29_s20, 512  ;;  %p217_p6 = scmp.lt.s32.totalorder %s29_s20, %s29_s20 }
  0x11   :  { %p213_p5 = scmp.ne.s32.totalorder %s29_s20, %s212_s21  ;;  %p218_p7 = scmp.lt.s32.totalorder %s212_s21, %s212_s21 }
  0x13   :  { %p219_p8 = por %p218_p7, %p217_p6 }
  0x15   :  { %p220_p9 = pnand %p219_p8, %p213_p5 }
  0x17   :  { %223 = shalt.err (!%p220_p9)
}
  0x18   :  { %34 = dma.hbm_to_vmem [thread:$0]  %s299_s1, 512, %s29_s20, [#allocation6], %s251_s15, %s251_s15, %s252_s16  }
  0x19   :  { %244 = dma.done.wait [#allocation3], 256  }
  0x1a   :  { %245 = vsyncadd [#allocation3], 4294967040 }
  0x1b   :  { %246 = dma.done.wait [#allocation6], 512  }
  0x1c   :  { %247 = vsyncadd [#allocation6], 4294966784  ;;  %vm56_vm0 = vcmask 261120   ;;  %v48_v0 = vld [vmem:[#allocation5 + $0x18] sm:$0xff]  ;;  %v47_v1 = vld [vmem:[#allocation5 + $0x10] sm:$0xff]  ;;  %vm138_vm1 = vcmask 785408  }
  0x1d   :  { %168 = vmatprep.subr.mxu0 %v48_v0  ;;  %v43_v2 = vld [vmem:[#allocation2] sm:$0xff]  ;;  %v46_v3 = vld [vmem:[#allocation5 + $0x8] sm:$0xff]  ;;  %v45_v4 = vld [vmem:[#allocation5] sm:$0xff]  ;;  %s254_s24 = smov [#allocation7]  }
  0x1e   :  { %169 = vmatpush3.msra.mxu0 %v48_v0  ;;  %176 = vmatprep.mubr.msk.f32.mxu0 %vm56_vm0, %v43_v2  ;;  %v44_v5 = vld [vmem:[#allocation2 + $0x8] sm:$0xff]  ;;  %v159_v6 = vld [vmem:[%s300_s2] ss:$0 sm:$0xff]  ;;  %s146_s25 = sshll.u32 %s254_s24, 4  ;;  %s147_s25 = int_to_ptr.vmem [resolvable:$true] %s146_s25 }
  0x1f   :  { %170 = vmatprep.subr.mxu0 %v47_v1  ;;  %s224_s26 = scalar_lea.vmem %s147_s25, 256  ;;  %p229_p11 = scmp.lt.s32.totalorder %s147_s25, %s147_s25 }
  0x20   :  { %171 = vmatpush3.msra.mxu0 %v47_v1  ;;  %p225_p10 = scmp.ne.s32.totalorder %s147_s25, %s224_s26  ;;  %p230_p12 = scmp.lt.s32.totalorder %s224_s26, %s224_s26 }
  0x21   :  { %172 = vmatprep.subr.mxu0 %v46_v3 }
  0x22   :  { %173 = vmatpush3.msra.mxu0 %v46_v3  ;;  %p231_p13 = por %p230_p12, %p229_p11 }
  0x23   :  { %174 = vmatprep.subr.mxu0 %v45_v4 }
  0x24   :  { %175 = vmatpush3.msra.mxu0 %v45_v4  ;;  %p232_p0 = pnand %p231_p13, %p225_p10 }
  0x25   :  { %177 = vmatmul.mubr.msk.f32.vlgmr.msra.gmra.mxu0 %vm56_vm0, %v44_v5 }
  0xe5   :  { %v178_v7 = vpop.f32.mrf.mxu0 }
  0xe6   :  { %v135_v8 = vadd.f32 %v178_v7, %v159_v6 }
  0xe7   :  { %v129_v9 = vpop.f32.mrf.mxu0 }
  0xe8   :  { %v130_v10 = vadd.f32 %v159_v6, %v129_v9  ;;  %140 = vst.msk [vmem:[#allocation7 + $0x8] sm:$0xff] %vm138_vm1, %v135_v8 }
  0xea   :  { %139 = vst.msk [vmem:[#allocation7] sm:$0xff] %vm138_vm1, %v130_v10 }
  0xeb   :  { %235 = shalt.err (!%p232_p0)
}
  0xec   :  { %152 = dma.vmem_to_hbm [thread:$0]  %s147_s25, 256, %s301_s3, [#allocation4], %s251_s15, %s251_s15, %s252_s16  }
  0xed   :  { %248 = dma.done.wait [#allocation4], 256  }
  0xee   :  { %249 = vsyncadd [#allocation4], 4294967040 }
  0xef   :  { %156 = vsyncpa [#allocation3], 1 }
  0xf0   :  { %157 = vsyncpa [#allocation6], 1 }
  0xf1   :  { %158 = vsyncpa [#allocation4], 1 }

</bundles_post_ra>
